<compile_context>
chip_gen: v7x
topology: tpu7x:2x2x1
jax: 0.10.0
libtpu: 0.0.40
codegen_flags: <defaults>
</compile_context>

<pallas_src>
import jax
import jax.numpy as jnp
from jax.experimental import pallas as pl
from jax.experimental.pallas import tpu as pltpu


def fuse_kernel(text_ref, img_ref, w1_ref, b1_ref, w2a_ref, w2b_ref, b2_ref,
                out_ref):
    # fc1: Linear(img_dim -> text_dim) + ReLU.  f32 VMEM activations are cast
    # to bf16 in-register for the MXU (hides under the matmul), f32 accumulate.
    h = jnp.dot(img_ref[...].astype(jnp.bfloat16), w1_ref[...],
                preferred_element_type=jnp.float32)
    h = jnp.maximum(h + b1_ref[...], 0.0)     # bias + ReLU in f32 (VPU; v5e-safe)

    # fc2 on the virtual concat [h, text].  BatchNorm(eval) scale/shift are
    # already folded into W2a_eff / W2b_eff / b2_eff, so only two matmuls remain.
    z = jnp.dot(h.astype(jnp.bfloat16), w2a_ref[...],
                preferred_element_type=jnp.float32)
    z = z + jnp.dot(text_ref[...].astype(jnp.bfloat16), w2b_ref[...],
                    preferred_element_type=jnp.float32)
    out_ref[...] = jnp.maximum(z + b2_ref[...], 0.0).astype(out_ref.dtype)


def _round_up(x, m):
    return ((x + m - 1) // m) * m


def _invariant_spec(shape):
    """BlockSpec for a grid-invariant operand: single-buffer it in VMEM."""
    index_map = lambda i: (0, 0)
    try:
        return pl.BlockSpec(shape, index_map, pipeline_mode=pl.Buffered(1))
    except TypeError:  # older jax without pipeline_mode -> default buffering
        return pl.BlockSpec(shape, index_map)


def fuse_layer_pallas(text, img, kernel_params, *, block_b=None,
                      out_dtype=jnp.float32):
    B, T = text.shape
    B2, I = img.shape
    assert B2 == B
    w1_t, b1, w2a_eff, w2b_eff, b2_eff = kernel_params
    # Perf note: T and I that are multiples of 128 keep the output lane-dense
    # and MXU tiles unpadded (biggest measured store-path lever); smaller dims
    # still run but pay masked partial stores.

    # ---- generation-aware VMEM budget ---------------------------------------
    try:
        vmem_cap = int(getattr(pltpu.get_tpu_info(), "vmem_capacity_bytes",
                               64 * 1024 * 1024))
    except Exception:
        vmem_cap = 64 * 1024 * 1024
    small_vmem = vmem_cap <= 64 * 1024 * 1024            # v7x-class: 64 MiB, 2 TCs
    vmem_limit = (40 if small_vmem else 96) * 1024 * 1024

    # ---- batch tile policy ---------------------------------------------------
    if block_b is None:
        if B < 16:
            block_b = B                                   # tiny batch: one full tile
        else:
            if small_vmem:
                # v7x: force >=2 grid steps so the "parallel" batch axis can be
                # split across the two TensorCores and DMA overlaps compute.
                n_steps = max(2, pl.cdiv(B, 512))
            else:
                # v5e/v6e: single TC, 128 MiB VMEM -> bigger tiles amortize the
                # ~0.35 us/step overhead (1024-row tiles once B >= 1024).
                n_steps = pl.cdiv(B, 1024 if B >= 1024 else 512)
            block_b = B if n_steps <= 1 else _round_up(pl.cdiv(B, n_steps), 16)
    else:
        block_b = max(1, min(block_b, B))
        if block_b != B:
            block_b = max(8, _round_up(block_b, 8))       # sublane granularity
    grid_b = pl.cdiv(B, block_b)
    # No wrapper-side pad / slice: the last grid step is a ragged tile; its OOB
    # rows compute garbage but rows are independent and OOB stores are dropped.

    flops = 2 * B * (I * T + 2 * T * T)
    bytes_accessed = (B * (T + I) * 4                           # f32 activations in
                      + B * T * jnp.dtype(out_dtype).itemsize   # output
                      + (I * T + 2 * T * T) * 2                 # bf16 weights
                      + 2 * T * 4)                              # f32 biases

    row = lambda v: v.reshape(1, -1)                      # (T,) -> (1, T) lane row

    return pl.pallas_call(
        fuse_kernel,
        out_shape=jax.ShapeDtypeStruct((B, T), out_dtype),
        grid_spec=pltpu.PrefetchScalarGridSpec(
            num_scalar_prefetch=0,
            grid=(grid_b,),
            in_specs=[
                pl.BlockSpec((block_b, T), lambda i: (i, 0)),   # text  (f32)
                pl.BlockSpec((block_b, I), lambda i: (i, 0)),   # img   (f32)
                _invariant_spec((I, T)),                        # W1      (bf16, in x out)
                _invariant_spec((1, T)),                        # b1      (f32)
                _invariant_spec((T, T)),                        # W2a_eff (bf16)
                _invariant_spec((T, T)),                        # W2b_eff (bf16)
                _invariant_spec((1, T)),                        # b2_eff  (f32)
            ],
            out_specs=pl.BlockSpec((block_b, T), lambda i: (i, 0)),
        ),
        compiler_params=pltpu.CompilerParams(
            dimension_semantics=("parallel",),
            vmem_limit_bytes=vmem_limit),
        cost_estimate=pl.CostEstimate(
            flops=flops, transcendentals=0, bytes_accessed=bytes_accessed),
    )(text, img, w1_t, row(b1), w2a_eff, w2b_eff, row(b2_eff))


def make_params(key, text_dim, img_dim):
    """Raw f32 parameters matching FuseLayer's PyTorch layouts.

    Note: the PyTorch module hardcodes BatchNorm1d(768*2), which presumes
    text_dim == 768; here the BN feature count is 2*text_dim so small demo
    shapes stay consistent.
    """
    ks = jax.random.split(key, 8)
    w1 = jax.random.normal(ks[0], (text_dim, img_dim), jnp.float32) * 0.05   # (out, in)
    b1 = jax.random.normal(ks[1], (text_dim,), jnp.float32) * 0.05
    gamma = 1.0 + 0.1 * jax.random.normal(ks[2], (2 * text_dim,), jnp.float32)
    beta = 0.1 * jax.random.normal(ks[3], (2 * text_dim,), jnp.float32)
    run_mean = 0.1 * jax.random.normal(ks[4], (2 * text_dim,), jnp.float32)
    run_var = jnp.abs(1.0 + 0.1 * jax.random.normal(ks[5], (2 * text_dim,), jnp.float32))
    w2 = jax.random.normal(ks[6], (text_dim, 2 * text_dim), jnp.float32) * 0.05
    b2 = jax.random.normal(ks[7], (text_dim,), jnp.float32) * 0.05
    return dict(w1=w1, b1=b1, gamma=gamma, beta=beta, mean=run_mean,
                var=run_var, w2=w2, b2=b2, eps=1e-5)


def prepare_kernel_params(raw):
    """Fold eval-mode BatchNorm into fc2 and pre-cast weights to bf16 (once)."""
    T = raw["w1"].shape[0]
    scale = raw["gamma"] / jnp.sqrt(raw["var"] + raw["eps"])
    shift = raw["beta"] - raw["mean"] * scale
    w1_t = raw["w1"].T                     # (img_dim, text_dim)
    w2_t = raw["w2"].T                     # (2*text_dim, text_dim)
    w2a = w2_t[:T, :]                      # multiplies the fc1(img) half of concat
    w2b = w2_t[T:, :]                      # multiplies the text half of concat
    # (x*scale + shift) @ W == x @ (scale[:,None]*W) + shift @ W  (exact fold).
    w2a_eff = scale[:T, None] * w2a
    w2b_eff = scale[T:, None] * w2b
    b2_eff = raw["b2"] + shift[:T] @ w2a + shift[T:] @ w2b
    return (w1_t.astype(jnp.bfloat16), raw["b1"],
            w2a_eff.astype(jnp.bfloat16), w2b_eff.astype(jnp.bfloat16), b2_eff)


def fuse_layer_ref(text, img, raw):
    """Pure-JAX f32 reference implementing the PyTorch eval-mode forward."""
    h = jnp.maximum(img @ raw["w1"].T + raw["b1"], 0.0)
    concat = jnp.concatenate([h, text], axis=1)
    bn = (concat - raw["mean"]) / jnp.sqrt(raw["var"] + raw["eps"]) * raw["gamma"] + raw["beta"]
    return jnp.maximum(bn @ raw["w2"].T + raw["b2"], 0.0)


if __name__ == "__main__":
    # Small but lane-dense demo shapes (T, I multiples of 128 -> unmasked stores).
    B, TEXT_DIM, IMG_DIM = 24, 128, 256

    key = jax.random.PRNGKey(0)
    k_text, k_img, k_params = jax.random.split(key, 3)
    text = jax.random.normal(k_text, (B, TEXT_DIM), jnp.float32)
    img = jax.random.normal(k_img, (B, IMG_DIM), jnp.float32)

    raw_params = make_params(k_params, TEXT_DIM, IMG_DIM)
    kparams = prepare_kernel_params(raw_params)
    ref = fuse_layer_ref(text, img, raw_params)

    # Default tile policy (auto block_b).
    out = jax.block_until_ready(fuse_layer_pallas(text, img, kparams))
    assert out.shape == (B, TEXT_DIM)
    # bf16 MXU inputs (f32 accumulation) -> tolerance loosened vs f32 reference.
    assert jnp.allclose(out, ref, atol=2e-2, rtol=2e-2), "mismatch vs JAX reference"

    # Multi-step grid with a ragged last tile (24 rows, block_b=16 -> 2 steps).
    out2 = jax.block_until_ready(fuse_layer_pallas(text, img, kparams, block_b=16))
    assert out2.shape == (B, TEXT_DIM)
    assert jnp.allclose(out2, ref, atol=2e-2, rtol=2e-2), "ragged-tile mismatch"

    print("KERNEL_OK")
</pallas_src>

<mosaic_0001>
module attributes {stable_mosaic.version = 11 : i64} {
  func.func @fuse_kernel(%arg0: i32, %arg1: memref<16x128xf32, #tpu.memory_space<vmem>>, %arg2: memref<16x256xf32, #tpu.memory_space<vmem>>, %arg3: memref<256x128xbf16, #tpu.memory_space<vmem>>, %arg4: memref<1x128xf32, #tpu.memory_space<vmem>>, %arg5: memref<128x128xbf16, #tpu.memory_space<vmem>>, %arg6: memref<128x128xbf16, #tpu.memory_space<vmem>>, %arg7: memref<1x128xf32, #tpu.memory_space<vmem>>, %arg8: memref<16x128xf32, #tpu.memory_space<vmem>>) attributes {dimension_semantics = [#tpu.dimension_semantics<parallel>], iteration_bounds = array<i64: 2>, scalar_prefetch = 0 : i64, scratch_operands = 0 : i64, tpu.core_type = #tpu.core_type<tc>, window_params = [{transform_indices = @transform_0, window_bounds = array<i64: 16, 128>}, {transform_indices = @transform_1, window_bounds = array<i64: 16, 256>}, {pipeline_mode = #tpu.pipeline_mode<synchronous>, transform_indices = @transform_2, window_bounds = array<i64: 256, 128>}, {pipeline_mode = #tpu.pipeline_mode<synchronous>, transform_indices = @transform_3, window_bounds = array<i64: 1, 128>}, {pipeline_mode = #tpu.pipeline_mode<synchronous>, transform_indices = @transform_4, window_bounds = array<i64: 128, 128>}, {pipeline_mode = #tpu.pipeline_mode<synchronous>, transform_indices = @transform_5, window_bounds = array<i64: 128, 128>}, {pipeline_mode = #tpu.pipeline_mode<synchronous>, transform_indices = @transform_6, window_bounds = array<i64: 1, 128>}, {transform_indices = @transform_7, window_bounds = array<i64: 16, 128>}]} {
    %c0 = arith.constant 0 : index
    %c0_0 = arith.constant 0 : index
    %0 = vector.load %arg2[%c0, %c0_0] : memref<16x256xf32, #tpu.memory_space<vmem>>, vector<16x256xf32>
    %1 = arith.truncf %0 : vector<16x256xf32> to vector<16x256xbf16>
    %c0_1 = arith.constant 0 : index
    %c0_2 = arith.constant 0 : index
    %2 = vector.load %arg3[%c0_1, %c0_2] : memref<256x128xbf16, #tpu.memory_space<vmem>>, vector<256x128xbf16>
    %cst = arith.constant dense<0.000000e+00> : vector<16x128xf32>
    %3 = tpu.matmul %1, %2, %cst {dimension_numbers = #tpu.dot_dimension_numbers<[1], [0], [0], [1], [0, 0, 1, 1], [], []>} : vector<16x256xbf16>, vector<256x128xbf16>, vector<16x128xf32> -> vector<16x128xf32>
    %c0_3 = arith.constant 0 : index
    %c0_4 = arith.constant 0 : index
    %4 = vector.load %arg4[%c0_3, %c0_4] : memref<1x128xf32, #tpu.memory_space<vmem>>, vector<1x128xf32>
    %5 = vector.broadcast %4 : vector<1x128xf32> to vector<16x128xf32>
    %6 = arith.addf %3, %5 : vector<16x128xf32>
    %cst_5 = arith.constant 0.000000e+00 : f32
    %7 = vector.broadcast %cst_5 : f32 to vector<16x128xf32>
    %8 = arith.maximumf %6, %7 : vector<16x128xf32>
    %9 = arith.truncf %8 : vector<16x128xf32> to vector<16x128xbf16>
    %c0_6 = arith.constant 0 : index
    %c0_7 = arith.constant 0 : index
    %10 = vector.load %arg5[%c0_6, %c0_7] : memref<128x128xbf16, #tpu.memory_space<vmem>>, vector<128x128xbf16>
    %cst_8 = arith.constant dense<0.000000e+00> : vector<16x128xf32>
    %11 = tpu.matmul %9, %10, %cst_8 {dimension_numbers = #tpu.dot_dimension_numbers<[1], [0], [0], [1], [0, 0, 1, 1], [], []>} : vector<16x128xbf16>, vector<128x128xbf16>, vector<16x128xf32> -> vector<16x128xf32>
    %c0_9 = arith.constant 0 : index
    %c0_10 = arith.constant 0 : index
    %12 = vector.load %arg1[%c0_9, %c0_10] : memref<16x128xf32, #tpu.memory_space<vmem>>, vector<16x128xf32>
    %13 = arith.truncf %12 : vector<16x128xf32> to vector<16x128xbf16>
    %c0_11 = arith.constant 0 : index
    %c0_12 = arith.constant 0 : index
    %14 = vector.load %arg6[%c0_11, %c0_12] : memref<128x128xbf16, #tpu.memory_space<vmem>>, vector<128x128xbf16>
    %cst_13 = arith.constant dense<0.000000e+00> : vector<16x128xf32>
    %15 = tpu.matmul %13, %14, %cst_13 {dimension_numbers = #tpu.dot_dimension_numbers<[1], [0], [0], [1], [0, 0, 1, 1], [], []>} : vector<16x128xbf16>, vector<128x128xbf16>, vector<16x128xf32> -> vector<16x128xf32>
    %16 = arith.addf %11, %15 : vector<16x128xf32>
    %c0_14 = arith.constant 0 : index
    %c0_15 = arith.constant 0 : index
    %17 = vector.load %arg7[%c0_14, %c0_15] : memref<1x128xf32, #tpu.memory_space<vmem>>, vector<1x128xf32>
    %18 = vector.broadcast %17 : vector<1x128xf32> to vector<16x128xf32>
    %19 = arith.addf %16, %18 : vector<16x128xf32>
    %cst_16 = arith.constant 0.000000e+00 : f32
    %20 = vector.broadcast %cst_16 : f32 to vector<16x128xf32>
    %21 = arith.maximumf %19, %20 : vector<16x128xf32>
    %c0_17 = arith.constant 0 : index
    %c0_18 = arith.constant 0 : index
    %22 = vector.load %arg8[%c0_17, %c0_18] : memref<16x128xf32, #tpu.memory_space<vmem>>, vector<16x128xf32>
    tpu.vector_store %arg8[%c0_17, %c0_18], %21 {strides = array<i32>} : memref<16x128xf32, #tpu.memory_space<vmem>>, vector<16x128xf32>,
    return
  }
  func.func @transform_0(%arg0: i32) -> (i32, i32) {
    %c0_i32 = arith.constant 0 : i32
    %c0_i32_0 = arith.constant 0 : i32
    return %arg0, %c0_i32 : i32, i32
  }
  func.func @transform_1(%arg0: i32) -> (i32, i32) {
    %c0_i32 = arith.constant 0 : i32
    %c0_i32_0 = arith.constant 0 : i32
    return %arg0, %c0_i32 : i32, i32
  }
  func.func @transform_2(%arg0: i32) -> (i32, i32) {
    %c0_i32 = arith.constant 0 : i32
    %c0_i32_0 = arith.constant 0 : i32
    %c0_i32_1 = arith.constant 0 : i32
    return %c0_i32, %c0_i32_0 : i32, i32
  }
  func.func @transform_3(%arg0: i32) -> (i32, i32) {
    %c0_i32 = arith.constant 0 : i32
    %c0_i32_0 = arith.constant 0 : i32
    %c0_i32_1 = arith.constant 0 : i32
    return %c0_i32, %c0_i32_0 : i32, i32
  }
  func.func @transform_4(%arg0: i32) -> (i32, i32) {
    %c0_i32 = arith.constant 0 : i32
    %c0_i32_0 = arith.constant 0 : i32
    %c0_i32_1 = arith.constant 0 : i32
    return %c0_i32, %c0_i32_0 : i32, i32
  }
  func.func @transform_5(%arg0: i32) -> (i32, i32) {
    %c0_i32 = arith.constant 0 : i32
    %c0_i32_0 = arith.constant 0 : i32
    %c0_i32_1 = arith.constant 0 : i32
    return %c0_i32, %c0_i32_0 : i32, i32
  }
  func.func @transform_6(%arg0: i32) -> (i32, i32) {
    %c0_i32 = arith.constant 0 : i32
    %c0_i32_0 = arith.constant 0 : i32
    %c0_i32_1 = arith.constant 0 : i32
    return %c0_i32, %c0_i32_0 : i32, i32
  }
  func.func @transform_7(%arg0: i32) -> (i32, i32) {
    %c0_i32 = arith.constant 0 : i32
    %c0_i32_0 = arith.constant 0 : i32
    return %arg0, %c0_i32 : i32, i32
  }
}

</mosaic_0001>

<bundles_post_ra>
// kernel: tpu_custom_call.1
= control target key start
LH: loop header
LB: loop body
LE: loop exit
PB: predicated region body
PF: predicated region fallthrough
CT: control target
= control target key end

     0   :  { %s1877_s0 = inlined_call_operand.hbm [shape: f32[24,128], index: 0, kind: input, shape index: {}]   ;;  %s1878_s1 = inlined_call_operand.hbm [shape: f32[24,256], index: 1, kind: input, shape index: {}]   ;;  %s1879_s2 = inlined_call_operand.hbm [shape: bf16[256,128], index: 2, kind: input, shape index: {}]   ;;  %s1880_s3 = inlined_call_operand.vmem [shape: f32[1,128], index: 3, kind: input, shape index: {}]   ;;  %s1881_s4 = inlined_call_operand.hbm [shape: bf16[128,128], index: 4, kind: input, shape index: {}]   ;;  %s1882_s5 = inlined_call_operand.hbm [shape: bf16[128,128], index: 5, kind: input, shape index: {}]   ;;  %s1883_s6 = inlined_call_operand.vmem [shape: f32[1,128], index: 6, kind: input, shape index: {}]   ;;  %s1884_s7 = inlined_call_operand.hbm [shape: f32[24,128], index: 7, kind: output, shape index: {}]  }
   0x1   :  { %1892 = sst [smem:[#allocation21_spill]] %s1881_s4 }
   0x2   :  { %12 = vsyncpa [#allocation3], 0 }
   0x3   :  { %14 = vsyncpa [#allocation3 + $0x1], 0 }
   0x4   :  { %15 = vsyncpa [#allocation6], 0 }
   0x5   :  { %17 = vsyncpa [#allocation6 + $0x1], 0 }
   0x6   :  { %18 = vsyncpa [#allocation9], 0 }
   0x7   :  { %19 = vsyncpa [#allocation4], 0 }
   0x8   :  { %21 = vsyncpa [#allocation4 + $0x1], 0  ;;  %s1512_s24 = smov 0   ;;  %s1514_s25 = smov 0  }
   0x9   :  { %s1516_s26 = smov 0   ;;  %s1518_s27 = smov 0  }
   0xa LB: > { %1893 = sst [smem:[#allocation17_spill]] %s1442_s24  ;;  %s1533_s28 = sadd.s32 4294967295, %s1454_s27   ;;  %s1454_s27 = sphi %s1518_s27, %s1917_s27   ;;  %s1450_s26 = sphi %s1516_s26, %s1921_s26   ;;  %s1446_s25 = sphi %s1514_s25, %s1920_s25   ;;  %s1442_s24 = sphi %s1512_s24, %s1919_s24  }
   0xb   : > { %s966_s29 = sadd.s32 4294967294, %s1454_s27   ;;  %s1537_s30 = sadd.s32 1, %s1454_s27  }
   0xc   : > { %1894 = sst [smem:[#allocation18_spill]] %s1537_s30  ;;  %s34_s8 = sadd.s32 1, %s1450_s26 }
   0xd   : > { %s31_s9 = ssub.s32 %s1454_s27, %s1537_s30  ;;  %p41_p0 = scmp.ne.s32.totalorder %s1450_s26, %s1446_s25 }
   0xe   : > { %p32_p1 = scmp.eq.s32.totalorder %s31_s9, 0  ;;  %p42_p2 = scmp.eq.s32.totalorder %s1454_s27, 0 }
   0xf   : > { %p47_p3 = scmp.ne.s32.totalorder %s1446_s25, %s1442_s24  ;;  %p1885_p4 = scmp.eq.s32.totalorder %s1533_s28, 0 }
  0x10   : > { %s1549_s10 = scalar_select %p32_p1, %s1450_s26, %s34_s8  }
  0x11   : > { %p1551_p5 = por %p42_p2, %p41_p0  ;;  %p1557_p6 = por %p1885_p4, %p47_p3 }
  0x12   : > { %1895 = sst [smem:[#allocation19_spill]] %s1549_s10  ;;  %p202_p7 = scmp.eq.s32.totalorder %s1533_s28, 1 }
  0x13   : > { %s1896_s11 = scalar_select %p1551_p5, 1, 0 }
  0x14   : > { %s1897_s12 = scalar_select %p1557_p6, 1, 0 }
  0x15   : > { %p208_p8 = scmp.eq.s32.totalorder %s966_s29, 1  ;;  %p967_p9 = scmp.ge.s32.totalorder %s1454_s27, 1 }
  0x16   : > { %p215_p10 = scmp.lt.s32.totalorder %s1454_s27, 3  ;;  %p1564_p11 = por %p202_p7, %p41_p0 }
  0x17   : > { %p1568_p12 = por %p208_p8, %p47_p3  ;;  %s1456_s16 = smov [#allocation8]  }
  0x18   : > { %s1898_s13 = scalar_select %p1564_p11, 1, 0 }
  0x19   : > { %s1899_s14 = scalar_select %p1568_p12, 1, 0 }
  0x1a   : > { %p1572_p13 = pnand %p967_p9, %p215_p10  ;;  %s243_s17 = sshll.u32 %s1456_s16, 4  ;;  %s244_s17 = int_to_ptr.vmem [resolvable:$true] %s243_s17 }
  0x1b   : > { %1900 = sst [smem:[#allocation20_spill]] %s1899_s14  ;;  %s1457_s19 = smov [#allocation7]  }
  0x1c   : > { %s1901_s15 = scalar_select %p1572_p13, 1, 0 }
  0x1d   : > { %p1138_p1 = pneg %p1572_p13  ;;  %s227_s20 = sshll.u32 %s1457_s19, 4  ;;  %s1584_s20 = int_to_ptr.vmem [resolvable:$true] %s227_s20 }
  0x1e   : > { %s1903_s4 = sld [smem:[#allocation21_spill]] }
  0x1f   : > { %p1580_p2 = pnand %p1138_p1, %p1885_p4 }
  0x21   : > { %p1594_p3 = pneg %p1580_p2 }
  0x24   : > { %s1236_s23 = scalar_lea.hbm %s1903_s4, 1024 }
  0x25   : > { %p1237_p0 = scmp.ne.s32.totalorder %s1903_s4, %s1236_s23  ;;  %p1243_p9 = scmp.lt.u32.totalorder %s1236_s23, %s1903_s4 }
  0x27   : > { %p1239_p7 = pnand %p1594_p3, %p1237_p0 }
  0x29   : > { %p1240_p8 = pneg %p1239_p7 }
  0x2b   : > { %p1245_p10 = pnand %p1243_p9, %p1240_p8 }
  0x2d   : > { %1248 = shalt.err (!%p1245_p10)
}
  0x2e   : > { %s1249_s21 = scalar_lea.vmem %s244_s17, 1024  ;;  %p1257_p11 = scmp.lt.s32.totalorder %s244_s17, %s244_s17 }
  0x2f   : > { %p1250_p1 = scmp.ne.s32.totalorder %s244_s17, %s1249_s21  ;;  %p1258_p6 = scmp.lt.s32.totalorder %s1249_s21, %s1249_s21 }
  0x31   : > { %p1252_p4 = pnand %p1250_p1, %p1594_p3  ;;  %p1259_p13 = por %p1258_p6, %p1257_p11 }
  0x33   : > { %p1253_p12 = pneg %p1252_p4 }
  0x35   : > { %p1260_p5 = pnand %p1259_p13, %p1253_p12 }
  0x37   : > { %1263 = shalt.err (!%p1260_p5)
}
  0x38   : > { %s1458_s22 = smov 64   ;;  %s1459_s29 = smov 4  }
  0x39   : > { %1144 = dma.hbm_to_vmem [thread:$0]  (!%p1580_p2), %s1903_s4, 1024, %s244_s17, [#allocation9], %s1458_s22, %s1458_s22, %s1459_s29  }
  0x3a   : > { %s1264_s10 = scalar_lea.hbm %s1879_s2, 2048 }
  0x3b   : > { %p1265_p4 = scmp.ne.s32.totalorder %s1879_s2, %s1264_s10  ;;  %p1271_p11 = scmp.lt.u32.totalorder %s1264_s10, %s1879_s2 }
  0x3d   : > { %p1267_p5 = pnand %p1265_p4, %p1594_p3 }
  0x3f   : > { %p1268_p6 = pneg %p1267_p5 }
  0x41   : > { %p1273_p12 = pnand %p1271_p11, %p1268_p6 }
  0x43   : > { %1276 = shalt.err (!%p1273_p12)
}
  0x44   : > { %s1277_s17 = scalar_lea.vmem %s1584_s20, 2048  ;;  %p1285_p8 = scmp.lt.s32.totalorder %s1584_s20, %s1584_s20 }
  0x45   : > { %p1278_p13 = scmp.ne.s32.totalorder %s1584_s20, %s1277_s17  ;;  %p1286_p9 = scmp.lt.s32.totalorder %s1277_s17, %s1277_s17 }
  0x47   : > { %p1280_p0 = pnand %p1278_p13, %p1594_p3  ;;  %p1287_p10 = por %p1286_p9, %p1285_p8 }
  0x49   : > { %p1281_p7 = pneg %p1280_p0 }
  0x4b   : > { %p1288_p1 = pnand %p1287_p10, %p1281_p7 }
  0x4d   : > { %1291 = shalt.err (!%p1288_p1)
}
  0x4e   : > { %1141 = dma.hbm_to_vmem [thread:$0]  (!%p1580_p2), %s1879_s2, 2048, %s1584_s20, [#allocation6], %s1458_s22, %s1458_s22, %s1459_s29  }
  0x4f   : > { %s1460_s10 = smov [#allocation10]   ;;  %s1292_s16 = scalar_lea.hbm %s1882_s5, 1024 }
  0x50   : > { %s256_s14 = sshll.u32 %s1460_s10, 4  ;;  %p1293_p4 = scmp.ne.s32.totalorder %s1882_s5, %s1292_s16  ;;  %s257_s14 = int_to_ptr.vmem [resolvable:$true] %s256_s14 }
  0x51   : > { %p1299_p11 = scmp.lt.u32.totalorder %s1292_s16, %s1882_s5 }
  0x52   : > { %p1295_p5 = pnand %p1293_p4, %p1594_p3 }
  0x54   : > { %p1296_p6 = pneg %p1295_p5 }
  0x56   : > { %p1301_p12 = pnand %p1299_p11, %p1296_p6 }
  0x58   : > { %1304 = shalt.err (!%p1301_p12)
}
  0x59   : > { %s1305_s20 = scalar_lea.vmem %s257_s14, 1024  ;;  %p1313_p8 = scmp.lt.s32.totalorder %s257_s14, %s257_s14 }
  0x5a   : > { %p1306_p13 = scmp.ne.s32.totalorder %s257_s14, %s1305_s20  ;;  %p1314_p9 = scmp.lt.s32.totalorder %s1305_s20, %s1305_s20 }
  0x5c   : > { %p1308_p0 = pnand %p1306_p13, %p1594_p3  ;;  %p1315_p10 = por %p1314_p9, %p1313_p8 }
  0x5e   : > { %p1309_p7 = pneg %p1308_p0 }
  0x60   : > { %p1316_p1 = pnand %p1315_p10, %p1309_p7 }
  0x62   : > { %1319 = shalt.err (!%p1316_p1)
}
  0x63   : > { %1147 = dma.hbm_to_vmem [thread:$0]  (!%p1580_p2), %s1882_s5, 1024, %s257_s14, [#allocation9], %s1458_s22, %s1458_s22, %s1459_s29  }
  0x64   : > { %p971_p4 = scmp.ge.s32.totalorder %s1454_s27, 2 }
  0x65   : > { %p1905_p3 = scmp.ne.s32.totalorder (!%p971_p4), %s1896_s11, 0 }
  0x66   : > { %269 = sbr.rel (%p971_p4) target bundleno = 181 (0xb5), region = 36 }
  0x6d   : > { %272 = sbr.rel (!%p1905_p3) target bundleno = 144 (0x90), region = 40  ;;  %s273_s9 = sand.u32 (%p1905_p3), 1, %s1450_s26  }
  0x6e   : > { %s973_s30 = sshll.u32 (%p1905_p3), %s1454_s27, 1  ;;  %s972_s18 = sshll.u32 (%p1905_p3), %s273_s9, 4 }
  0x6f   : > { %s279_s10 = ssub.s32 (%p1905_p3), 3, %s973_s30  ;;  %s1670_s29 = scalar_lea.sflag (%p1905_p3), [#allocation3], %s273_s9 }
  0x70   : > { %p280_p5 = scmp.lt.s32.totalorder (%p1905_p3), %s279_s10, 2  ;;  %s277_s14 = scalar_lea.vmem (%p1905_p3), [#allocation2], %s972_s18 }
  0x74   : > { %s1923_s10 = smov (!%p280_p5, %s279_s10), 2 }
  0x75   : > { %s1667_s23 = sshll.u32 %s1923_s10, 7 }
  0x76   : > { %s284_s22 = ssub.s32 256, %s1667_s23 }
  0x77   : > { %285 = vsyncadd %s1670_s29, %s284_s22  ;;  %p975_p2 = scmp.ne.s32.totalorder %s1667_s23, 0  ;;  %s1038_s8 = sshll.u32 %s1454_s27, 8 }
  0x78   : > { %s1678_s21 = scalar_lea.hbm %s1877_s0, %s1038_s8  ;;  %s290_s17 = sshll.u32 %s277_s14, 4  ;;  %s1680_s17 = int_to_ptr.vmem [resolvable:$true] %s290_s17 }
  0x79   : > { %s1320_s20 = scalar_lea.hbm %s1678_s21, %s1667_s23  ;;  %s1324_s9 = scalar_lea.hbm %s1877_s0, 384 }
  0x7a   : > { %p1321_p6 = scmp.ne.s32.totalorder %s1678_s21, %s1320_s20  ;;  %p1325_p13 = scmp.lt.u32.totalorder %s1678_s21, %s1877_s0 }
  0x7b   : > { %p1326_p0 = scmp.lt.u32.totalorder %s1324_s9, %s1320_s20  ;;  %p1328_p8 = scmp.lt.u32.totalorder %s1320_s20, %s1678_s21 }
  0x7c   : > { %p1322_p11 = pnand %p1321_p6, %p975_p2 }
  0x7d   : > { %p1327_p7 = por %p1326_p0, %p1325_p13 }
  0x7e   : > { %p1323_p12 = pneg %p1322_p11 }
  0x7f   : > { %p1329_p9 = por %p1328_p8, %p1327_p7 }
  0x81   : > { %p1330_p10 = pnand %p1329_p9, %p1323_p12 }
  0x83   : > { %1333 = shalt.err (!%p1330_p10)
}
  0x84   : > { %s1334_s10 = scalar_lea.vmem %s1680_s17, %s1667_s23  ;;  %s1461_s22 = smov [#allocation2]  }
  0x85   : > { %p1335_p1 = scmp.ne.s32.totalorder %s1680_s17, %s1334_s10  ;;  %s1338_s14 = sshll.u32 %s1461_s22, 4  ;;  %s1339_s14 = int_to_ptr.vmem [resolvable:$false] %s1338_s14 }
  0x86   : > { %s1340_s8 = scalar_lea.vmem %s1339_s14, 512  ;;  %p1341_p6 = scmp.lt.s32.totalorder %s1680_s17, %s1339_s14 }
  0x87   : > { %p1336_p3 = pnand %p1335_p1, %p975_p2  ;;  %p1342_p11 = scmp.lt.s32.totalorder %s1340_s8, %s1334_s10 }
  0x89   : > { %p1337_p5 = pneg %p1336_p3  ;;  %p1343_p13 = por %p1342_p11, %p1341_p6 }
  0x8b   : > { %p1344_p0 = pnand %p1343_p13, %p1337_p5 }
  0x8d   : > { %1347 = shalt.err (!%p1344_p0)
}
  0x8e   : > { %s1462_s16 = smov 128   ;;  %s1463_s19 = smov 8  }
  0x8f   : > { %296 = dma.hbm_to_vmem [thread:$0]  (%p975_p2), %s1678_s21, %s1667_s23, %s1680_s17, %s1670_s29, %s1462_s16, %s1462_s16, %s1463_s19  }
  0x90 PF: > { %p1906_p12 = scmp.ne.s32.totalorder %s1896_s11, 0 }
  0x91   : > { %s300_s20 = sand.u32 (%p1906_p12), 1, %s1454_s27   ;;  %s302_s4 = sand.u32 (%p1906_p12), 1, %s1450_s26  }
  0x92   : > { %299 = sbr.rel (!%p1906_p12) target bundleno = 181 (0xb5), region = 44  ;;  %s979_s24 = sshll.u32 (%p1906_p12), %s302_s4, 5 }
  0x93   : > { %s980_s9 = sshll.u32 (%p1906_p12), %s1454_s27, 1  ;;  %s1715_s22 = scalar_lea.sflag (%p1906_p12), [#allocation6], %s300_s20 }
  0x94   : > { %s306_s30 = ssub.s32 (%p1906_p12), 3, %s980_s9  ;;  %s304_s23 = scalar_lea.vmem (%p1906_p12), [#allocation5], %s979_s24 }
  0x95   : > { %p307_p7 = scmp.lt.s32.totalorder (%p1906_p12), %s306_s30, 2 }
  0x99   : > { %s1925_s30 = smov (!%p307_p7, %s306_s30), 2 }
  0x9a   : > { %s1712_s18 = sshll.u32 %s1925_s30, 8 }
  0x9b   : > { %s312_s10 = ssub.s32 512, %s1712_s18 }
  0x9c   : > { %313 = vsyncadd %s1715_s22, %s312_s10  ;;  %p983_p2 = scmp.ne.s32.totalorder %s1712_s18, 0  ;;  %s1041_s11 = sshll.u32 %s1454_s27, 9 }
  0x9d   : > { %s1723_s17 = scalar_lea.hbm %s1878_s1, %s1041_s11  ;;  %s319_s14 = sshll.u32 %s304_s23, 4  ;;  %s1725_s14 = int_to_ptr.vmem [resolvable:$true] %s319_s14 }
  0x9e   : > { %s1348_s8 = scalar_lea.hbm %s1723_s17, %s1712_s18  ;;  %s1352_s20 = scalar_lea.hbm %s1878_s1, 768 }
  0x9f   : > { %p1349_p8 = scmp.ne.s32.totalorder %s1723_s17, %s1348_s8  ;;  %p1353_p1 = scmp.lt.u32.totalorder %s1723_s17, %s1878_s1 }
  0xa0   : > { %p1354_p3 = scmp.lt.u32.totalorder %s1352_s20, %s1348_s8  ;;  %p1356_p6 = scmp.lt.u32.totalorder %s1348_s8, %s1723_s17 }
  0xa1   : > { %p1350_p9 = pnand %p1349_p8, %p983_p2 }
  0xa2   : > { %p1355_p5 = por %p1354_p3, %p1353_p1 }
  0xa3   : > { %p1351_p10 = pneg %p1350_p9 }
  0xa4   : > { %p1357_p11 = por %p1356_p6, %p1355_p5 }
  0xa6   : > { %p1358_p13 = pnand %p1357_p11, %p1351_p10 }
  0xa8   : > { %1361 = shalt.err (!%p1358_p13)
}
  0xa9   : > { %s1362_s9 = scalar_lea.vmem %s1725_s14, %s1712_s18  ;;  %s1464_s30 = smov [#allocation5]  }
  0xaa   : > { %p1363_p0 = scmp.ne.s32.totalorder %s1725_s14, %s1362_s9  ;;  %s1366_s10 = sshll.u32 %s1464_s30, 4  ;;  %s1367_s10 = int_to_ptr.vmem [resolvable:$false] %s1366_s10 }
  0xab   : > { %s1368_s23 = scalar_lea.vmem %s1367_s10, 1024  ;;  %p1369_p8 = scmp.lt.s32.totalorder %s1725_s14, %s1367_s10 }
  0xac   : > { %p1364_p12 = pnand %p1363_p0, %p983_p2  ;;  %p1370_p9 = scmp.lt.s32.totalorder %s1368_s23, %s1362_s9 }
  0xae   : > { %p1365_p7 = pneg %p1364_p12  ;;  %p1371_p1 = por %p1370_p9, %p1369_p8 }
  0xb0   : > { %p1372_p3 = pnand %p1371_p1, %p1365_p7 }
  0xb2   : > { %1375 = shalt.err (!%p1372_p3)
}
  0xb3   : > { %s1465_s11 = smov 256   ;;  %s1466_s29 = smov 16  }
  0xb4   : > { %325 = dma.hbm_to_vmem [thread:$0]  (%p983_p2), %s1723_s17, %s1712_s18, %s1725_s14, %s1715_s22, %s1465_s11, %s1465_s11, %s1466_s29  }
  0xb5 PF: > { %p1907_p10 = scmp.ne.s32.totalorder %s1901_s15, 0 }
  0xb6   : > { %s1755_s21 = sand.u32 (!%p1907_p10), 1, %s1446_s25   ;;  %p1908_p5 = scmp.ne.s32.totalorder (!%p1907_p10), %s1897_s12, 0 }
  0xb7   : > { %331 = sbr.rel (%p1907_p10) target bundleno = 705 (0x2c1), region = 48  ;;  %s989_s8 = sshll.u32 (!%p1907_p10), %s1755_s21, 4 }
  0xb8   : > { %s334_s16 = scalar_lea.sflag (!%p1907_p10), [#allocation3], %s1755_s21  ;;  %s1761_s19 = scalar_lea.vmem (!%p1907_p10), [#allocation2], %s989_s8 }
  0xbe   : > { %1421 = dma.done.wait (%p1908_p5), %s334_s16, 256  }
  0xbf   : > { %1423 = vsyncadd (%p1908_p5), %s334_s16, 4294967040  ;;  %s342_s15 = sand.u32 1, %s1533_s28   ;;  %s990_s18 = sshll.u32 %s1755_s21, 5 }
  0xc0   : > { %s343_s22 = scalar_lea.sflag [#allocation6], %s342_s15  ;;  %s1769_s17 = scalar_lea.vmem [#allocation5], %s990_s18 }
  0xc1   : > { %1425 = dma.done.wait (%p1908_p5), %s343_s22, 512  }
  0xc2   : > { %1427 = vsyncadd (%p1908_p5), %s343_s22, 4294966784  ;;  %p1909_p2 = scmp.eq.s32.totalorder %s1533_s28, 0 }
  0xc4   : > { %1429 = dma.done.wait (%p1909_p2), [#allocation6], 2048   ;;  %p1910_p6 = pmov %p1909_p2 }
  0xc5   : > { %p1911_p11 = pmov %p1909_p2 }
  0xc6   : > { %1431 = vsyncadd (%p1910_p6), [#allocation6], 4294965248 }
  0xc7   : > { %1433 = dma.done.wait (%p1911_p11), [#allocation9], 2048   ;;  %p1912_p13 = pmov %p1909_p2 }
  0xc8   : > { %v1467_v0 = vmov 0.0   ;;  %v1204_v1 = vld [vmem:[#allocation7 + $0x40] sm:$0xff]   ;;  %v1206_v3 = vld [vmem:[#allocation7 + $0x48] sm:$0xff]   ;;  %v1208_v5 = vld [vmem:[#allocation7 + $0x50] sm:$0xff]   ;;  %vm1468_vm0 = vmmov 0   ;;  %s393_s24 = scalar_lea.vmem [#allocation11], %s989_s8 }
  0xc9   : > { %1435 = vsyncadd (%p1912_p13), [#allocation9], 4294965248  ;;  %1083 = vmatprep.subr.bf16.mxu1 %v1467_v0  ;;  %v1205_v2 = vld [vmem:[#allocation7] sm:$0xff]   ;;  %1043 = vmatprep.subr.bf16.mxu0 %v1204_v1  ;;  %v1207_v4 = vld [vmem:[#allocation7 + $0x8] sm:$0xff]   ;;  %s823_s9 = scalar_lea.sflag [#allocation4], %s1755_s21  ;;  %p1913_p0 = scmp.ne.s32.totalorder %s1898_s13, 0 }
  0xca   : > { %1044 = vmatpush3.bf16.msra.mxu0 %v1205_v2  ;;  %v1209_v6 = vld [vmem:[#allocation7 + $0x10] sm:$0xff]   ;;  %v1210_v7 = vld [vmem:[#allocation7 + $0x58] sm:$0xff]   ;;  %v1212_v9 = vld [vmem:[#allocation7 + $0x60] sm:$0xff]   ;;  %1099 = vmatprep.mubr.msk.bf16.mxu1 %vm1468_vm0, %v1467_v0  ;;  %s1030_s30 = sshll.u32 (%p1913_p0), %s1533_s28, 1 }
  0xcb   : > { %1045 = vmatprep.subr.bf16.mxu0 %v1206_v3  ;;  %v1211_v8 = vld [vmem:[#allocation7 + $0x18] sm:$0xff]   ;;  %v1213_v10 = vld [vmem:[#allocation7 + $0x20] sm:$0xff]   ;;  %v1214_v11 = vld [vmem:[#allocation7 + $0x68] sm:$0xff]   ;;  %s831_s10 = ssub.s32 (%p1913_p0), 3, %s1030_s30 }
  0xcc   : > { %v412_v12 = vld [vmem:[%s1769_s17 + $0x8] sm:$0xff]  ;;  %v414_v13 = vld [vmem:[%s1769_s17 + $0x18] sm:$0xff]  ;;  %v1220_v16 = vld [vmem:[#allocation10] sm:$0xff]   ;;  %p832_p12 = scmp.lt.s32.totalorder (%p1913_p0), %s831_s10, 2 }
  0xcd   : > { %v1215_v14 = vld [vmem:[#allocation7 + $0x28] sm:$0xff]   ;;  %v416_v15 = vpack.c.bf16 %v414_v13, %v412_v12  ;;  %v1216_v17 = vld [vmem:[#allocation7 + $0x70] sm:$0xff]   ;;  %1084 = vmatpush3.bf16.msra.mxu1 %v1220_v16  ;;  %v1218_v20 = vld [vmem:[#allocation7 + $0x78] sm:$0xff]  }
  0xce   : > { %1046 = vmatpush3.bf16.msra.mxu0 %v1207_v4  ;;  %v1222_v18 = vld [vmem:[#allocation10 + $0x8] sm:$0xff]   ;;  %1085 = vmatprep.subr.bf16.mxu1 %v1467_v0  ;;  %v1217_v19 = vld [vmem:[#allocation7 + $0x30] sm:$0xff]   ;;  %v1219_v22 = vld [vmem:[#allocation7 + $0x38] sm:$0xff]  }
  0xcf   : > { %1047 = vmatprep.subr.bf16.mxu0 %v1208_v5  ;;  %584 = vmatprep.mubr.bf16.mxu0 %v416_v15  ;;  %v1224_v21 = vld [vmem:[#allocation10 + $0x10] sm:$0xff]   ;;  %v411_v23 = vld [vmem:[%s1769_s17] sm:$0xff]  ;;  %v1226_v25 = vld [vmem:[#allocation10 + $0x18] sm:$0xff]  }
  0xd0   : > { %v413_v24 = vld [vmem:[%s1769_s17 + $0x10] sm:$0xff]  ;;  %v1221_v27 = vld [vmem:[#allocation8] sm:$0xff]   ;;  %v1223_v29 = vld [vmem:[#allocation8 + $0x8] sm:$0xff]  }
  0xd1   : > { %1086 = vmatpush3.bf16.msra.mxu1 %v1222_v18  ;;  %v415_v26 = vpack.c.bf16 %v413_v24, %v411_v23  ;;  %v1228_v28 = vld [vmem:[#allocation10 + $0x20] sm:$0xff]   ;;  %v1230_v30 = vld [vmem:[#allocation10 + $0x28] sm:$0xff]   ;;  %v1225_v31 = vld [vmem:[#allocation8 + $0x10] sm:$0xff]  }
  0xd2   : > { %1048 = vmatpush3.bf16.msra.mxu0 %v1209_v6  ;;  %1087 = vmatprep.subr.bf16.mxu1 %v1467_v0  ;;  %v1227_v32 = vld [vmem:[#allocation8 + $0x18] sm:$0xff]   ;;  %v1229_v33 = vld [vmem:[#allocation8 + $0x20] sm:$0xff]   ;;  %v1231_v34 = vld [vmem:[#allocation8 + $0x28] sm:$0xff]  }
  0xd3   : > { %1049 = vmatprep.subr.bf16.mxu0 %v1210_v7  ;;  %v1232_v35 = vld [vmem:[#allocation10 + $0x30] sm:$0xff]   ;;  %v1234_v37 = vld [vmem:[#allocation10 + $0x38] sm:$0xff]   ;;  %v995_v43 = vld [vmem:[%s1880_s3] ss:$0 sm:$0xff] }
  0xd4   : > { %v1233_v36 = vld [vmem:[#allocation8 + $0x30] sm:$0xff]   ;;  %v613_v39 = vld [vmem:[%s1761_s19 + $0x8] sm:$0xff]  ;;  %v1028_v59 = vld [vmem:[%s1883_s6] ss:$0 sm:$0xff] }
  0xd5   : > { %1088 = vmatpush3.bf16.msra.mxu1 %v1224_v21  ;;  %v612_v38 = vld [vmem:[%s1761_s19] sm:$0xff]  ;;  %v1235_v41 = vld [vmem:[#allocation8 + $0x38] sm:$0xff]  }
  0xd6   : > { %1050 = vmatpush3.bf16.msra.mxu0 %v1211_v8  ;;  %1089 = vmatprep.subr.bf16.mxu1 %v1467_v0  ;;  %v614_v40 = vpack.c.bf16 %v613_v39, %v612_v38 }
  0xd7   : > { %1051 = vmatprep.subr.bf16.mxu0 %v1212_v9 }
  0xd9   : > { %1090 = vmatpush3.bf16.msra.mxu1 %v1226_v25 }
  0xda   : > { %1052 = vmatpush3.bf16.msra.mxu0 %v1213_v10  ;;  %1091 = vmatprep.subr.bf16.mxu1 %v1467_v0 }
  0xdb   : > { %1053 = vmatprep.subr.bf16.mxu0 %v1214_v11 }
  0xdd   : > { %1092 = vmatpush3.bf16.msra.mxu1 %v1228_v28 }
  0xde   : > { %1054 = vmatpush3.bf16.msra.mxu0 %v1215_v14  ;;  %1093 = vmatprep.subr.bf16.mxu1 %v1467_v0 }
  0xdf   : > { %1055 = vmatprep.subr.bf16.mxu0 %v1216_v17 }
  0xe1   : > { %1094 = vmatpush3.bf16.msra.mxu1 %v1230_v30 }
  0xe2   : > { %1056 = vmatpush3.bf16.msra.mxu0 %v1217_v19  ;;  %1095 = vmatprep.subr.bf16.mxu1 %v1467_v0 }
  0xe3   : > { %1057 = vmatprep.subr.bf16.mxu0 %v1218_v20 }
  0xe5   : > { %1096 = vmatpush3.bf16.msra.mxu1 %v1232_v35 }
  0xe6   : > { %1058 = vmatpush3.bf16.msra.mxu0 %v1219_v22  ;;  %1097 = vmatprep.subr.bf16.mxu1 %v1467_v0 }
  0xe7   : > { %1103 = vmatprep.subr.bf16.mxu0 %v1467_v0 }
  0xe9   : > { %585 = vmatmul.mubr.bf16.vlgmr.msra.gmra.mrb[0].mxu0 %v415_v26  ;;  %1098 = vmatpush3.bf16.msra.mxu1 %v1234_v37 }
  0xea   : > { %1104 = vmatpush3.bf16.msra.mxu0 %v1221_v27  ;;  %1119 = vmatprep.mubr.msk.bf16.mxu0 %vm1468_vm0, %v1467_v0 }
  0xeb   : > { %1105 = vmatprep.subr.bf16.mxu0 %v1467_v0 }
  0xec   : > { %1100 = vmatmul.mubr.bf16.vlgmr.msra.gmra.mrb[0].mxu1 %v614_v40 }
  0xee   : > { %1106 = vmatpush3.bf16.msra.mxu0 %v1223_v29 }
  0xef   : > { %1107 = vmatprep.subr.bf16.mxu0 %v1467_v0 }
  0xf2   : > { %1108 = vmatpush3.bf16.msra.mxu0 %v1225_v31 }
  0xf3   : > { %1109 = vmatprep.subr.bf16.mxu0 %v1467_v0 }
  0xf6   : > { %1110 = vmatpush3.bf16.msra.mxu0 %v1227_v32 }
  0xf7   : > { %1111 = vmatprep.subr.bf16.mxu0 %v1467_v0 }
  0xfa   : > { %1112 = vmatpush3.bf16.msra.mxu0 %v1229_v33 }
  0xfb   : > { %1113 = vmatprep.subr.bf16.mxu0 %v1467_v0 }
  0xfe   : > { %1114 = vmatpush3.bf16.msra.mxu0 %v1231_v34 }
  0xff   : > { %1115 = vmatprep.subr.bf16.mxu0 %v1467_v0 }
 0x102   : > { %1116 = vmatpush3.bf16.msra.mxu0 %v1233_v36 }
 0x103   : > { %1117 = vmatprep.subr.bf16.mxu0 %v1467_v0 }
 0x106   : > { %1118 = vmatpush3.bf16.msra.mxu0 %v1235_v41 }
 0x1bc   : > { %v1059_v42 = vpop.f32.mrb[0].mxu0 }
 0x1bd   : > { %v1060_v44 = vpop.f32.mrb[1].mxu0 }
 0x1be   : > { %v1061_v45 = vadd.f32 %v1060_v44, %v1059_v42  ;;  %v1062_v46 = vpop.f32.mrb[2].mxu0 }
 0x1bf   : > { %v1063_v47 = vpop.f32.mrb[3].mxu0  ;;  %v713_v54 = vpop.f32.mrb[0].mxu1 }
 0x1c0   : > { %v587_v48 = vadd.f32 %v1061_v45, %v995_v43  ;;  %v1064_v49 = vadd.f32 %v1063_v47, %v1062_v46  ;;  %v1101_v55 = vpop.f32.mrb[1].mxu1 }
 0x1c1   : > { %v716_v56 = vpop.f32.mrb[2].mxu1 }
 0x1c2   : > { %v590_v50 = vadd.f32 %v1064_v49, %v995_v43  ;;  %v593_v51 = vmax.f32 %v587_v48, 0.0  ;;  %v1102_v57 = vpop.f32.mrb[3].mxu1 }
 0x1c4   : > { %v594_v52 = vmax.f32 %v590_v50, 0.0 }
 0x1c6   : > { %v595_v53 = vpack.c.bf16 %v594_v52, %v593_v51 }
 0x1c8   : > { %1120 = vmatmul.mubr.bf16.vlgmr.msra.gmra.mrb[4].mxu0 %v595_v53 }
 0x29b   : > { %v802_v58 = vpop.f32.mrb[4].mxu0 }
 0x29c   : > { %v803_v60 = vadd.f32 %v802_v58, %v713_v54  ;;  %v1121_v61 = vpop.f32.mrb[5].mxu0 }
 0x29d   : > { %v805_v62 = vpop.f32.mrb[6].mxu0 }
 0x29e   : > { %v816_v63 = vadd.f32 %v1028_v59, %v803_v60  ;;  %v806_v0 = vadd.f32 %v805_v62, %v716_v56  ;;  %v1122_v1 = vpop.f32.mrb[7].mxu0  ;;  %829 = sbr.rel (!%p1913_p0) target bundleno = 705 (0x2c1), region = 72 }
 0x2a0   : > { %v818_v2 = vmax.f32 %v816_v63, 0.0  ;;  %v817_v3 = vadd.f32 %v1028_v59, %v806_v0 }
 0x2a2   : > { %820 = vst [vmem:[%s393_s24] sm:$0xff] %v818_v2  ;;  %v819_v4 = vmax.f32 %v817_v3, 0.0 }
 0x2a4   : > { %821 = vst [vmem:[%s393_s24 + $0x8] sm:$0xff] %v819_v4 }
 0x2a5   : > { %s1927_s10 = smov (!%p832_p12, %s831_s10), 2 }
 0x2a6   : > { %s1819_s23 = sshll.u32 %s1927_s10, 7 }
 0x2a7   : > { %s836_s11 = ssub.s32 256, %s1819_s23 }
 0x2a8   : > { %837 = vsyncadd %s823_s9, %s836_s11  ;;  %p1032_p7 = scmp.ne.s32.totalorder %s1819_s23, 0  ;;  %s1042_s29 = sshll.u32 %s1533_s28, 8 }
 0x2a9   : > { %s1829_s16 = scalar_lea.hbm %s1884_s7, %s1042_s29  ;;  %s842_s19 = sshll.u32 %s393_s24, 4  ;;  %s1831_s19 = int_to_ptr.vmem [resolvable:$true] %s842_s19 }
 0x2aa   : > { %s1376_s15 = scalar_lea.vmem %s1831_s19, %s1819_s23  ;;  %s1469_s18 = smov [#allocation11]  }
 0x2ab   : > { %p1377_p8 = scmp.ne.s32.totalorder %s1831_s19, %s1376_s15  ;;  %s1380_s22 = sshll.u32 %s1469_s18, 4  ;;  %s1381_s22 = int_to_ptr.vmem [resolvable:$false] %s1380_s22 }
 0x2ac   : > { %s1382_s28 = scalar_lea.vmem %s1381_s22, 512  ;;  %p1383_p3 = scmp.lt.s32.totalorder %s1831_s19, %s1381_s22 }
 0x2ad   : > { %p1378_p9 = pnand %p1377_p8, %p1032_p7  ;;  %p1384_p10 = scmp.lt.s32.totalorder %s1382_s28, %s1376_s15 }
 0x2af   : > { %p1379_p1 = pneg %p1378_p9  ;;  %p1385_p5 = por %p1384_p10, %p1383_p3 }
 0x2b1   : > { %p1386_p2 = pnand %p1385_p5, %p1379_p1 }
 0x2b3   : > { %1389 = shalt.err (!%p1386_p2)
}
 0x2b4   : > { %s1390_s17 = scalar_lea.hbm %s1829_s16, %s1819_s23  ;;  %s1394_s20 = scalar_lea.hbm %s1884_s7, 384 }
 0x2b5   : > { %p1391_p6 = scmp.ne.s32.totalorder %s1829_s16, %s1390_s17  ;;  %p1395_p0 = scmp.lt.u32.totalorder %s1829_s16, %s1884_s7 }
 0x2b6   : > { %p1396_p12 = scmp.lt.u32.totalorder %s1394_s20, %s1390_s17  ;;  %p1398_p9 = scmp.lt.u32.totalorder %s1390_s17, %s1829_s16 }
 0x2b7   : > { %p1392_p11 = pnand %p1391_p6, %p1032_p7 }
 0x2b8   : > { %p1397_p8 = por %p1396_p12, %p1395_p0 }
 0x2b9   : > { %p1393_p13 = pneg %p1392_p11 }
 0x2ba   : > { %p1399_p1 = por %p1398_p9, %p1397_p8 }
 0x2bc   : > { %p1400_p3 = pnand %p1399_p1, %p1393_p13 }
 0x2be   : > { %1403 = shalt.err (!%p1400_p3)
}
 0x2bf   : > { %s1470_s30 = smov 128   ;;  %s1471_s10 = smov 8  }
 0x2c0   : > { %848 = dma.vmem_to_hbm [thread:$0]  (%p1032_p7), %s1831_s19, %s1819_s23, %s1829_s16, %s823_s9, %s1470_s30, %s1470_s30, %s1471_s10  }
 0x2c1 PF: > { %s1914_s11 = sld [smem:[#allocation17_spill]]  ;;  %s1915_s29 = sld [smem:[#allocation20_spill]] }
 0x2c7   : > { %s857_s13 = sand.u32 1, %s1914_s11   ;;  %p1916_p10 = scmp.ne.s32.totalorder %s1915_s29, 0 }
 0x2c8   : > { %s858_s8 = scalar_lea.sflag [#allocation4], %s857_s13 }
 0x2c9   : > { %p1149_p5 = pnand %p971_p4, %p1916_p10 }
 0x2cb   : > { %1437 = dma.done.wait (!%p1149_p5), %s858_s8, 256  }
 0x2cc   : > { %1439 = vsyncadd (!%p1149_p5), %s858_s8, 4294967040  ;;  %s1917_s27 = sld [smem:[#allocation18_spill]]  ;;  %s1918_s15 = sld [smem:[#allocation19_spill]] }
 0x2cd   : > { %s1919_s24 = smov %s1446_s25  ;;  %s1920_s25 = smov %s1450_s26 }
 0x2d2   : > { %p24_p2 = scmp.ge.s32.totalorder %s1917_s27, 4   ;;  %s1921_s26 = smov %s1918_s15 }
 0x2d4   :  { %26 = sbr.rel (!%p24_p2) target bundleno = 10 (0xa), region = 118 }
 0x2db   :  { %863 = vsyncpa [#allocation3], 1 }
 0x2dc   :  { %865 = vsyncpa [#allocation3 + $0x1], 1 }
 0x2dd   :  { %866 = vsyncpa [#allocation6], 1 }
 0x2de   :  { %868 = vsyncpa [#allocation6 + $0x1], 1 }
 0x2df   :  { %869 = vsyncpa [#allocation9], 1 }
 0x2e0   :  { %870 = vsyncpa [#allocation4], 1 }
 0x2e1   :  { %872 = vsyncpa [#allocation4 + $0x1], 1 }

</bundles_post_ra>
